<compile_context>
chip_gen: v7x
topology: tpu7x:2x2x1
jax: 0.10.0
libtpu: 0.0.40
codegen_flags: <defaults>
</compile_context>

<pallas_src>
import functools

import jax
import jax.numpy as jnp
from jax.experimental import pallas as pl
from jax.experimental.pallas import tpu as pltpu

_LANE = 128


def _cdiv(a, b):
    return -(-a // b)


def _round_up(x, m):
    return (x + m - 1) // m * m


def _chip_params():
    """Per-input tile byte target and whether to split the grid across TCs (v7x)."""
    tile_target = 4 << 20          # v5e / v6e: ~4 MiB per input tile
    core_split = False
    try:
        info = pltpu.get_tpu_info()
        vmem_cap = getattr(info, "vmem_capacity_bytes", None)
        if vmem_cap is not None and vmem_cap <= (64 << 20):
            # v7x-class chip: 64 MiB VMEM, 2 TensorCores, ~3.2 TB/s HBM.
            tile_target = 6 << 20
            core_split = True
    except Exception:
        pass
    return tile_target, core_split


def _dice_partials_kernel(yp_ref, yt_ref, num_ref, add_ref, *,
                          tile_r, t_per_split, r_total, needs_edge):
    """Accumulate per-sample sum(yp*yt) and sum(yp+yt) over a (N, TILE_R, 128) tile."""
    s = pl.program_id(0)
    j = pl.program_id(1)

    @pl.when(j == 0)
    def _():
        num_ref[...] = jnp.zeros_like(num_ref)
        add_ref[...] = jnp.zeros_like(add_ref)

    def accum(row_limit):
        yp = yp_ref[...].astype(jnp.float32)
        yt = yt_ref[...].astype(jnp.float32)
        if row_limit is not None:
            rows = jax.lax.broadcasted_iota(jnp.int32, yp.shape, 1)
            keep = rows < row_limit
            yp = jnp.where(keep, yp, 0.0)
            yt = jnp.where(keep, yt, 0.0)
        # One mul / one add per element; the axis-1 reduction is mostly whole-vreg
        # VALU adds plus one small XLU sublane reduce per step.  Accumulators are
        # lane-dense (1, N, 128) blocks resident in VMEM across the j axis.
        num_ref[...] += jnp.sum(yp * yt, axis=1)[None, :, :]
        add_ref[...] += jnp.sum(yp + yt, axis=1)[None, :, :]

    if needs_edge:
        tj = s * t_per_split + j            # unclamped global tile index
        rows_left = r_total - tj * tile_r   # rows of real data in this tile

        @pl.when(rows_left >= tile_r)       # interior tile: no mask needed
        def _():
            accum(None)

        @pl.when(jnp.logical_and(rows_left > 0, rows_left < tile_r))
        def _():                            # ragged last tile: mask garbage rows
            accum(rows_left)
        # rows_left <= 0: duplicated tile of an uneven split -> contributes nothing.
    else:
        accum(None)


def dice_coefficient_mean(y_pred, y_true, epsilon=1e-6):
    """Equivalent of DiceCoefficient()(y_pred, y_true) -> scalar batch mean."""
    assert y_pred.shape == y_true.shape
    y_pred = jnp.asarray(y_pred)
    y_true = jnp.asarray(y_true)

    n = y_pred.shape[0]
    f = 1
    for d in y_pred.shape[1:]:
        f *= d

    # Native-dtype, copy-free reshapes (row-major contiguous).
    yp = y_pred.reshape(n, f)
    yt = y_true.reshape(n, f)

    if f % _LANE != 0:
        # Rare fallback (feature size not a multiple of 128): pad up to the next
        # lane multiple.  Zero padding is exact because epsilon*F uses original F.
        # TODO(synk): replace this HBM pad copy with an in-kernel lane mask.
        pad = _LANE - (f % _LANE)
        yp = jnp.pad(yp, ((0, 0), (0, pad)))
        yt = jnp.pad(yt, ((0, 0), (0, pad)))

    r_total = yp.shape[1] // _LANE
    yp3 = yp.reshape(n, r_total, _LANE)
    yt3 = yt.reshape(n, r_total, _LANE)

    itemsize = max(yp3.dtype.itemsize, yt3.dtype.itemsize)
    tile_target, core_split = _chip_params()

    # Row alignment for full sublane packing: 8 (f32), 16 (bf16), 32 (int8/fp8).
    row_align = max(8, 32 // itemsize)
    rows_target = max(
        row_align,
        (tile_target // (n * _LANE * itemsize)) // row_align * row_align)
    tile_r = min(rows_target, _round_up(r_total, row_align))

    t_total = _cdiv(r_total, tile_r)
    nsplit = 2 if t_total >= 2 else 1
    t_per_split = _cdiv(t_total, nsplit)
    needs_edge = (r_total % tile_r != 0) or (nsplit * t_per_split != t_total)

    def in_map(s, j):
        tj = s * t_per_split + j
        # Clamp so the (at most one) overflow step of an uneven split never DMAs
        # out of bounds; the kernel skips its contribution via the row mask.
        return (0, jnp.minimum(tj, t_total - 1), 0)

    kernel = functools.partial(
        _dice_partials_kernel,
        tile_r=tile_r, t_per_split=t_per_split, r_total=r_total,
        needs_edge=needs_edge)

    tile_bytes = n * tile_r * _LANE * itemsize
    vmem_limit = int(min(max(32 << 20, 4 * tile_bytes + (8 << 20)), 48 << 20))
    if core_split and nsplit == 2:
        dim_sems = (pltpu.CORE_PARALLEL, pltpu.ARBITRARY)   # use both v7x TCs
    else:
        dim_sems = ("parallel", "arbitrary")

    num_part, add_part = pl.pallas_call(
        kernel,
        out_shape=(
            jax.ShapeDtypeStruct((nsplit, n, _LANE), jnp.float32),
            jax.ShapeDtypeStruct((nsplit, n, _LANE), jnp.float32),
        ),
        grid=(nsplit, t_per_split),
        in_specs=[
            pl.BlockSpec((n, tile_r, _LANE), in_map),
            pl.BlockSpec((n, tile_r, _LANE), in_map),
        ],
        out_specs=(
            pl.BlockSpec((1, n, _LANE), lambda s, j: (s, 0, 0)),
            pl.BlockSpec((1, n, _LANE), lambda s, j: (s, 0, 0)),
        ),
        compiler_params=pltpu.CompilerParams(
            dimension_semantics=dim_sems,
            vmem_limit_bytes=vmem_limit,
        ),
        cost_estimate=pl.CostEstimate(
            flops=4 * n * r_total * _LANE,
            transcendentals=0,
            bytes_accessed=n * r_total * _LANE
            * (yp3.dtype.itemsize + yt3.dtype.itemsize)
            + 2 * nsplit * n * _LANE * 4,
        ),
    )(yp3, yt3)

    # Finalize on the tiny (nsplit, N, 128) partials: fold the 2x factor and the
    # per-element epsilon (epsilon * F_original) once per sample, then average.
    num = jnp.sum(num_part, axis=(0, 2))   # (N,)
    add = jnp.sum(add_part, axis=(0, 2))   # (N,)
    dice = (2.0 * num) / (add + jnp.float32(epsilon) * jnp.float32(f))
    return jnp.mean(dice)


def _reference(y_pred, y_true, epsilon=1e-6):
    n = y_pred.shape[0]
    yp = y_pred.reshape(n, -1).astype(jnp.float32)
    yt = y_true.reshape(n, -1).astype(jnp.float32)
    num = jnp.sum(2.0 * yp * yt, axis=1)
    den = jnp.sum(yp + yt + epsilon, axis=1)
    return jnp.mean(num / den)


if __name__ == "__main__":
    key = jax.random.PRNGKey(0)
    k1, k2 = jax.random.split(key)
    # NCHW inputs: batch=2, channels=4, spatial=16x16 (probabilities / masks).
    y_pred = jax.nn.sigmoid(jax.random.normal(k1, (2, 4, 16, 16), jnp.float32))
    y_true = (jax.random.uniform(k2, (2, 4, 16, 16)) > 0.5).astype(jnp.float32)

    result = dice_coefficient_mean(y_pred, y_true)
    jax.block_until_ready(result)

    ref = _reference(y_pred, y_true)
    assert jnp.allclose(result, ref, rtol=1e-4, atol=1e-6), (result, ref)
    print("KERNEL_OK")
</pallas_src>

<mosaic_0001>
module attributes {stable_mosaic.version = 11 : i64} {
  func.func @_dice_partials_kernel(%arg0: i32, %arg1: i32, %arg2: memref<2x8x128xf32, #tpu.memory_space<vmem>>, %arg3: memref<2x8x128xf32, #tpu.memory_space<vmem>>, %arg4: memref<1x2x128xf32, #tpu.memory_space<vmem>>, %arg5: memref<1x2x128xf32, #tpu.memory_space<vmem>>) attributes {dimension_semantics = [#tpu.dimension_semantics<parallel>, #tpu.dimension_semantics<arbitrary>], iteration_bounds = array<i64: 1, 1>, scalar_prefetch = 0 : i64, scratch_operands = 0 : i64, tpu.core_type = #tpu.core_type<tc>, window_params = [{transform_indices = @transform_0, window_bounds = array<i64: 2, 8, 128>}, {transform_indices = @transform_1, window_bounds = array<i64: 2, 8, 128>}, {transform_indices = @transform_2, window_bounds = array<i64: 1, 2, 128>}, {transform_indices = @transform_3, window_bounds = array<i64: 1, 2, 128>}]} {
    %c0_i32 = arith.constant 0 : i32
    %0 = arith.cmpi eq, %arg1, %c0_i32 : i32
    %1 = arith.extui %0 : i1 to i32
    %c0_i32_0 = arith.constant 0 : i32
    %2 = arith.cmpi ne, %1, %c0_i32_0 : i32
    scf.if %2 {
      %cst_19 = arith.constant 0.000000e+00 : f32
      %17 = vector.broadcast %cst_19 : f32 to vector<1x2x128xf32>
      %c0_20 = arith.constant 0 : index
      %c0_21 = arith.constant 0 : index
      %c0_22 = arith.constant 0 : index
      %18 = vector.load %arg4[%c0_20, %c0_21, %c0_22] : memref<1x2x128xf32, #tpu.memory_space<vmem>>, vector<1x2x128xf32>
      tpu.vector_store %arg4[%c0_20, %c0_21, %c0_22], %17 {strides = array<i32>} : memref<1x2x128xf32, #tpu.memory_space<vmem>>, vector<1x2x128xf32>,
      %cst_23 = arith.constant 0.000000e+00 : f32
      %19 = vector.broadcast %cst_23 : f32 to vector<1x2x128xf32>
      %c0_24 = arith.constant 0 : index
      %c0_25 = arith.constant 0 : index
      %c0_26 = arith.constant 0 : index
      %20 = vector.load %arg5[%c0_24, %c0_25, %c0_26] : memref<1x2x128xf32, #tpu.memory_space<vmem>>, vector<1x2x128xf32>
      tpu.vector_store %arg5[%c0_24, %c0_25, %c0_26], %19 {strides = array<i32>} : memref<1x2x128xf32, #tpu.memory_space<vmem>>, vector<1x2x128xf32>,
    } else {
    }
    %c0 = arith.constant 0 : index
    %c0_1 = arith.constant 0 : index
    %c0_2 = arith.constant 0 : index
    %3 = vector.load %arg2[%c0, %c0_1, %c0_2] : memref<2x8x128xf32, #tpu.memory_space<vmem>>, vector<2x8x128xf32>
    %c0_3 = arith.constant 0 : index
    %c0_4 = arith.constant 0 : index
    %c0_5 = arith.constant 0 : index
    %4 = vector.load %arg3[%c0_3, %c0_4, %c0_5] : memref<2x8x128xf32, #tpu.memory_space<vmem>>, vector<2x8x128xf32>
    %c0_6 = arith.constant 0 : index
    %c0_7 = arith.constant 0 : index
    %c0_8 = arith.constant 0 : index
    %5 = vector.load %arg4[%c0_6, %c0_7, %c0_8] : memref<1x2x128xf32, #tpu.memory_space<vmem>>, vector<1x2x128xf32>
    %6 = arith.mulf %3, %4 : vector<2x8x128xf32>
    %cst = arith.constant dense<0.000000e+00> : vector<2x128xf32>
    %7 = vector.multi_reduction <add>, %6, %cst [1] : vector<2x8x128xf32> to vector<2x128xf32>
    %8 = vector.shape_cast %7 : vector<2x128xf32> to vector<1x2x128xf32>
    %9 = arith.addf %5, %8 : vector<1x2x128xf32>
    %c0_9 = arith.constant 0 : index
    %c0_10 = arith.constant 0 : index
    %c0_11 = arith.constant 0 : index
    %10 = vector.load %arg4[%c0_9, %c0_10, %c0_11] : memref<1x2x128xf32, #tpu.memory_space<vmem>>, vector<1x2x128xf32>
    tpu.vector_store %arg4[%c0_9, %c0_10, %c0_11], %9 {strides = array<i32>} : memref<1x2x128xf32, #tpu.memory_space<vmem>>, vector<1x2x128xf32>,
    %c0_12 = arith.constant 0 : index
    %c0_13 = arith.constant 0 : index
    %c0_14 = arith.constant 0 : index
    %11 = vector.load %arg5[%c0_12, %c0_13, %c0_14] : memref<1x2x128xf32, #tpu.memory_space<vmem>>, vector<1x2x128xf32>
    %12 = arith.addf %3, %4 : vector<2x8x128xf32>
    %cst_15 = arith.constant dense<0.000000e+00> : vector<2x128xf32>
    %13 = vector.multi_reduction <add>, %12, %cst_15 [1] : vector<2x8x128xf32> to vector<2x128xf32>
    %14 = vector.shape_cast %13 : vector<2x128xf32> to vector<1x2x128xf32>
    %15 = arith.addf %11, %14 : vector<1x2x128xf32>
    %c0_16 = arith.constant 0 : index
    %c0_17 = arith.constant 0 : index
    %c0_18 = arith.constant 0 : index
    %16 = vector.load %arg5[%c0_16, %c0_17, %c0_18] : memref<1x2x128xf32, #tpu.memory_space<vmem>>, vector<1x2x128xf32>
    tpu.vector_store %arg5[%c0_16, %c0_17, %c0_18], %15 {strides = array<i32>} : memref<1x2x128xf32, #tpu.memory_space<vmem>>, vector<1x2x128xf32>,
    return
  }
  func.func @transform_0(%arg0: i32, %arg1: i32) -> (i32, i32, i32) {
    %c1_i32 = arith.constant 1 : i32
    %0 = arith.muli %arg0, %c1_i32 : i32
    %1 = arith.addi %0, %arg1 : i32
    %c0_i32 = arith.constant 0 : i32
    %2 = arith.minsi %1, %c0_i32 : i32
    %c0_i32_0 = arith.constant 0 : i32
    %c0_i32_1 = arith.constant 0 : i32
    %c0_i32_2 = arith.constant 0 : i32
    return %c0_i32_0, %2, %c0_i32_1 : i32, i32, i32
  }
  func.func @transform_1(%arg0: i32, %arg1: i32) -> (i32, i32, i32) {
    %c1_i32 = arith.constant 1 : i32
    %0 = arith.muli %arg0, %c1_i32 : i32
    %1 = arith.addi %0, %arg1 : i32
    %c0_i32 = arith.constant 0 : i32
    %2 = arith.minsi %1, %c0_i32 : i32
    %c0_i32_0 = arith.constant 0 : i32
    %c0_i32_1 = arith.constant 0 : i32
    %c0_i32_2 = arith.constant 0 : i32
    return %c0_i32_0, %2, %c0_i32_1 : i32, i32, i32
  }
  func.func @transform_2(%arg0: i32, %arg1: i32) -> (i32, i32, i32) {
    %c0_i32 = arith.constant 0 : i32
    %c0_i32_0 = arith.constant 0 : i32
    %c0_i32_1 = arith.constant 0 : i32
    return %arg0, %c0_i32, %c0_i32_0 : i32, i32, i32
  }
  func.func @transform_3(%arg0: i32, %arg1: i32) -> (i32, i32, i32) {
    %c0_i32 = arith.constant 0 : i32
    %c0_i32_0 = arith.constant 0 : i32
    %c0_i32_1 = arith.constant 0 : i32
    return %arg0, %c0_i32, %c0_i32_0 : i32, i32, i32
  }
}

</mosaic_0001>

<bundles_post_ra>
// kernel: tpu_custom_call.1
= control target key start
LH: loop header
LB: loop body
LE: loop exit
PB: predicated region body
PF: predicated region fallthrough
CT: control target
= control target key end

     0   :  { %9 = vsyncpa [#allocation3], 0  ;;  %s324_s0 = inlined_call_operand.hbm [shape: f32[2,8,128], index: 0, kind: input, shape index: {}]   ;;  %s325_s1 = inlined_call_operand.hbm [shape: f32[2,8,128], index: 1, kind: input, shape index: {}]   ;;  %s326_s2 = inlined_call_operand.hbm [shape: f32[1,2,128], index: 2, kind: output, shape index: {0}]   ;;  %s327_s3 = inlined_call_operand.hbm [shape: f32[1,2,128], index: 3, kind: output, shape index: {1}]  }
   0x1   :  { %10 = vsyncpa [#allocation6], 0 }
   0x2   :  { %11 = vsyncpa [#allocation4], 0 }
   0x3   :  { %12 = vsyncpa [#allocation9], 0  ;;  %s249_s12 = smov [#allocation2]   ;;  %s153_s16 = scalar_lea.hbm %s324_s0, 256 }
   0x4   :  { %s23_s13 = sshll.u32 %s249_s12, 4  ;;  %p154_p0 = scmp.ne.s32.totalorder %s324_s0, %s153_s16  ;;  %s24_s13 = int_to_ptr.vmem [resolvable:$true] %s23_s13 }
   0x5   :  { %p157_p1 = scmp.lt.u32.totalorder %s153_s16, %s324_s0 }
   0x7   :  { %p159_p2 = pnand %p157_p1, %p154_p0 }
   0x9   :  { %162 = shalt.err (!%p159_p2)
}
   0xa   :  { %s163_s21 = scalar_lea.vmem %s24_s13, 256  ;;  %p168_p4 = scmp.lt.s32.totalorder %s24_s13, %s24_s13 }
   0xb   :  { %p164_p3 = scmp.ne.s32.totalorder %s24_s13, %s163_s21  ;;  %p169_p5 = scmp.lt.s32.totalorder %s163_s21, %s163_s21 }
   0xd   :  { %p170_p6 = por %p169_p5, %p168_p4 }
   0xf   :  { %p171_p7 = pnand %p170_p6, %p164_p3 }
  0x11   :  { %174 = shalt.err (!%p171_p7)
}
  0x12   :  { %s250_s22 = smov 128   ;;  %s251_s23 = smov 8  }
  0x13   :  { %29 = dma.hbm_to_vmem [thread:$0]  %s324_s0, 256, %s24_s13, [#allocation3], %s250_s22, %s250_s22, %s251_s23  }
  0x14   :  { %s252_s26 = smov [#allocation5]   ;;  %s175_s30 = scalar_lea.hbm %s325_s1, 256 }
  0x15   :  { %s40_s27 = sshll.u32 %s252_s26, 4  ;;  %p176_p8 = scmp.ne.s32.totalorder %s325_s1, %s175_s30  ;;  %s41_s27 = int_to_ptr.vmem [resolvable:$true] %s40_s27 }
  0x16   :  { %p179_p9 = scmp.lt.u32.totalorder %s175_s30, %s325_s1 }
  0x18   :  { %p181_p10 = pnand %p179_p9, %p176_p8 }
  0x1a   :  { %184 = shalt.err (!%p181_p10)
}
  0x1b   :  { %s185_s8 = scalar_lea.vmem %s41_s27, 256  ;;  %p190_p12 = scmp.lt.s32.totalorder %s41_s27, %s41_s27 }
  0x1c   :  { %p186_p11 = scmp.ne.s32.totalorder %s41_s27, %s185_s8  ;;  %p191_p13 = scmp.lt.s32.totalorder %s185_s8, %s185_s8 }
  0x1e   :  { %p192_p0 = por %p191_p13, %p190_p12 }
  0x20   :  { %p193_p1 = pnand %p192_p0, %p186_p11 }
  0x22   :  { %196 = shalt.err (!%p193_p1)
}
  0x23   :  { %46 = dma.hbm_to_vmem [thread:$0]  %s325_s1, 256, %s41_s27, [#allocation6], %s250_s22, %s250_s22, %s251_s23  }
  0x24   :  { %241 = dma.done.wait [#allocation3], 256  }
  0x25   :  { %242 = vsyncadd [#allocation3], 4294967040 }
  0x26   :  { %243 = dma.done.wait [#allocation6], 256  }
  0x27   :  { %244 = vsyncadd [#allocation6], 4294967040  ;;  %v253_v0 = vmov 0.0   ;;  %v65_v1 = vld [vmem:[#allocation2] sm:$0xff]  ;;  %v66_v2 = vld [vmem:[#allocation2 + $0x8] sm:$0xff]  ;;  %vm86_vm0 = vcmask 1041409  }
  0x28   :  { %63 = vst [vmem:[#allocation7] sm:$0x3] %v253_v0  ;;  %64 = vst [vmem:[#allocation8] sm:$0x3] %v253_v0  ;;  %v67_v3 = vld [vmem:[#allocation5] sm:$0xff]  ;;  %v68_v4 = vld [vmem:[#allocation5 + $0x8] sm:$0xff] }
  0x29   :  { %v70_v5 = vmul.f32 %v67_v3, %v65_v1  ;;  %v92_v6 = vadd.f32 %v67_v3, %v65_v1  ;;  %v71_v7 = vmul.f32 %v68_v4, %v66_v2  ;;  %v93_v8 = vadd.f32 %v68_v4, %v66_v2  ;;  %s254_s1 = smov [#allocation7]   ;;  %s255_s11 = smov [#allocation8]  }
  0x2a   :  { %s118_s10 = sshll.u32 %s254_s1, 4  ;;  %s128_s12 = sshll.u32 %s255_s11, 4  ;;  %s119_s10 = int_to_ptr.vmem [resolvable:$true] %s118_s10  ;;  %s129_s12 = int_to_ptr.vmem [resolvable:$true] %s128_s12 }
  0x2b   :  { %v72_v9 = vrot.slane %v70_v5, 4  ;;  %v94_v10 = vrot.slane %v92_v6, 4  ;;  %v78_v11 = vrot.slane %v71_v7, 4  ;;  %v100_v12 = vrot.slane %v93_v8, 4  ;;  %s197_s13 = scalar_lea.vmem %s119_s10, 32  ;;  %p202_p3 = scmp.lt.s32.totalorder %s119_s10, %s119_s10 }
  0x2c   :  { %p198_p2 = scmp.ne.s32.totalorder %s119_s10, %s197_s13  ;;  %p203_p4 = scmp.lt.s32.totalorder %s197_s13, %s197_s13 }
  0x2d   :  { %v73_v13 = vadd.f32 %v72_v9, %v70_v5  ;;  %v95_v14 = vadd.f32 %v94_v10, %v92_v6  ;;  %v79_v15 = vadd.f32 %v78_v11, %v71_v7  ;;  %v101_v16 = vadd.f32 %v100_v12, %v93_v8 }
  0x2e   :  { %p204_p5 = por %p203_p4, %p202_p3 }
  0x2f   :  { %v74_v17 = vrot.slane %v73_v13, 2  ;;  %v96_v18 = vrot.slane %v95_v14, 2  ;;  %v80_v19 = vrot.slane %v79_v15, 2  ;;  %v102_v20 = vrot.slane %v101_v16, 2  ;;  %v69_v31 = vld [vmem:[#allocation7] sm:$0x3] }
  0x30   :  { %v91_v33 = vld [vmem:[#allocation8] sm:$0x3]  ;;  %p205_p6 = pnand %p204_p5, %p198_p2 }
  0x31   :  { %v75_v21 = vadd.f32 %v74_v17, %v73_v13  ;;  %v97_v22 = vadd.f32 %v96_v18, %v95_v14  ;;  %v81_v23 = vadd.f32 %v80_v19, %v79_v15  ;;  %v103_v24 = vadd.f32 %v102_v20, %v101_v16 }
  0x33   :  { %v76_v25 = vrot.slane %v75_v21, 1  ;;  %v98_v26 = vrot.slane %v97_v22, 1  ;;  %v82_v27 = vrot.slane %v81_v23, 1  ;;  %v104_v28 = vrot.slane %v103_v24, 1 }
  0x35   :  { %v77_v29 = vadd.f32 %v76_v25, %v75_v21  ;;  %v99_v30 = vadd.f32 %v98_v26, %v97_v22  ;;  %v83_v32 = vadd.f32 %v82_v27, %v81_v23  ;;  %v105_v34 = vadd.f32 %v104_v28, %v103_v24 }
  0x37   :  { %v87_v35 = vsel %vm86_vm0, %v83_v32, %v77_v29  ;;  %v108_v36 = vsel %vm86_vm0, %v105_v34, %v99_v30 }
  0x38   :  { %v89_v37 = vadd.f32 %v87_v35, %v69_v31  ;;  %v110_v38 = vadd.f32 %v108_v36, %v91_v33 }
  0x3a   :  { %90 = vst [vmem:[#allocation7] sm:$0x3] %v89_v37  ;;  %111 = vst [vmem:[#allocation8] sm:$0x3] %v110_v38 }
  0x3b   :  { %208 = shalt.err (!%p205_p6)
}
  0x3c   :  { %s209_s16 = scalar_lea.hbm %s326_s2, 32 }
  0x3d   :  { %p210_p7 = scmp.ne.s32.totalorder %s326_s2, %s209_s16  ;;  %p213_p8 = scmp.lt.u32.totalorder %s209_s16, %s326_s2 }
  0x3f   :  { %p215_p9 = pnand %p213_p8, %p210_p7 }
  0x41   :  { %218 = shalt.err (!%p215_p9)
}
  0x42   :  { %121 = dma.vmem_to_hbm [thread:$0]  %s119_s10, 32, %s326_s2, [#allocation4]  }
  0x43   :  { %s219_s23 = scalar_lea.vmem %s129_s12, 32  ;;  %p224_p11 = scmp.lt.s32.totalorder %s129_s12, %s129_s12 }
  0x44   :  { %p220_p10 = scmp.ne.s32.totalorder %s129_s12, %s219_s23  ;;  %p225_p12 = scmp.lt.s32.totalorder %s219_s23, %s219_s23 }
  0x46   :  { %p226_p13 = por %p225_p12, %p224_p11 }
  0x48   :  { %p227_p0 = pnand %p226_p13, %p220_p10 }
  0x4a   :  { %230 = shalt.err (!%p227_p0)
}
  0x4b   :  { %s231_s26 = scalar_lea.hbm %s327_s3, 32 }
  0x4c   :  { %p232_p1 = scmp.ne.s32.totalorder %s327_s3, %s231_s26  ;;  %p235_p2 = scmp.lt.u32.totalorder %s231_s26, %s327_s3 }
  0x4e   :  { %p237_p3 = pnand %p235_p2, %p232_p1 }
  0x50   :  { %240 = shalt.err (!%p237_p3)
}
  0x51   :  { %131 = dma.vmem_to_hbm [thread:$0]  %s129_s12, 32, %s327_s3, [#allocation9]  }
  0x52   :  { %245 = dma.done.wait [#allocation4], 32  }
  0x53   :  { %246 = vsyncadd [#allocation4], 4294967264 }
  0x54   :  { %247 = dma.done.wait [#allocation9], 32  }
  0x55   :  { %248 = vsyncadd [#allocation9], 4294967264 }
  0x56   :  { %138 = vsyncpa [#allocation3], 1 }
  0x57   :  { %139 = vsyncpa [#allocation6], 1 }
  0x58   :  { %140 = vsyncpa [#allocation4], 1 }
  0x59   :  { %141 = vsyncpa [#allocation9], 1 }

</bundles_post_ra>
